<compile_context>
chip_gen: v6e
topology: v6e:2x2x1
jax: 0.10.0
libtpu: 0.0.40
codegen_flags: <defaults>
</compile_context>

<pallas_src>
import jax
import jax.numpy as jnp
from jax.experimental import pallas as pl
from jax.experimental.pallas import tpu as pltpu


def _round_up(x, m):
    return ((x + m - 1) // m) * m


def _linear_kernel(x_ref, wt_ref, b_ref, o_ref):
    # x_ref: (tm, K)   wt_ref: (K, tn)   b_ref: (1, tn)   o_ref: (tm, tn)
    acc = jnp.dot(x_ref[...], wt_ref[...], preferred_element_type=jnp.float32)
    o_ref[...] = (acc + b_ref[...]).astype(o_ref.dtype)


def softmax_margin_forward(x, weight, bias, *, tm=None, compute_dtype=None,
                           vmem_limit_bytes=None):
    """out = x @ weight.T + bias   (PyTorch nn.Linear semantics)

    x:      (M, K)
    weight: (N, K)   (PyTorch layout: (class_number, input_dim))
    bias:   (N,)
    returns (M, N) in x.dtype
    """
    M, K = x.shape
    N, K2 = weight.shape
    assert K == K2, "input_dim mismatch"
    out_dtype = x.dtype
    cdt = jnp.dtype(compute_dtype) if compute_dtype is not None else jnp.dtype(x.dtype)
    in_sz = cdt.itemsize
    out_sz = jnp.dtype(out_dtype).itemsize

    # Lane-dense output: pad classes to a 128 multiple (weight/bias only; K is
    # never padded).
    Np = _round_up(N, 128)

    # ---- N tiling -----------------------------------------------------------
    # Keep the whole (K, Np) weight resident (single-buffered) when small;
    # otherwise tile N so weight/output blocks fit VMEM even on v7x.
    if K * Np * in_sz <= 12 * 1024 * 1024:
        tn = Np
    elif Np % 512 == 0:
        tn = 512
    elif Np % 256 == 0:
        tn = 256
    else:
        tn = 128
    n_blocks = Np // tn
    w_bufs = 1 if n_blocks == 1 else 2  # single-buffer constant-index blocks

    # ---- M tiling -----------------------------------------------------------
    if tm is None:
        # >= 4 grid steps along M when M is large (>= 2 per core on v7x
        # megacore) so the tile-(i+1) DMA overlaps compute of tile i.
        tm = min(512, max(8, _round_up(-(-M // 4), 8)))
        # Prefer a tm that divides M -> no M padding, final slice is a no-op.
        if M % 8 == 0:
            t = tm
            while t > 8 and M % t != 0:
                t -= 8
            tm = t
    tm = max(8, _round_up(int(tm), 8))

    def _need_bytes(tm_):
        m_blocks_ = _round_up(M, tm_) // tm_
        x_bufs_ = 1 if m_blocks_ == 1 else 2
        return (x_bufs_ * tm_ * K * in_sz          # x tiles
                + w_bufs * K * tn * in_sz          # weight tile(s)
                + w_bufs * 8 * tn * 4              # bias (sublane-padded)
                + 2 * tm_ * tn * out_sz)           # output tiles

    # Clamp tm so the working set fits a conservative VMEM budget (v7x-safe).
    while _need_bytes(tm) > 44 * 1024 * 1024 and tm > 8:
        tm = max(8, _round_up(tm // 2, 8))
    # TODO(synk): for K so large that even tm=8 / tn=128 overflows VMEM, add a
    # K reduction grid axis with an f32 VMEM accumulator.

    Mp = _round_up(M, tm)
    m_blocks = Mp // tm
    x_bufs = 1 if m_blocks == 1 else 2

    if vmem_limit_bytes is None:
        vmem_limit_bytes = min(48 * 1024 * 1024,
                               max(16 * 1024 * 1024,
                                   _need_bytes(tm) + 4 * 1024 * 1024))

    # ---- operand prep (no-ops when already aligned) --------------------------
    x_p = x.astype(cdt)
    if Mp != M:
        x_p = jnp.pad(x_p, ((0, Mp - M), (0, 0)))
    # One-time (K, Np) transpose of the PyTorch-layout weight: amortized over
    # every M tile; keeps the kernel a plain MXU matmul (no in-kernel transpose).
    wt_p = weight.astype(cdt).T
    b_p = bias.astype(jnp.float32).reshape(1, N)
    if Np != N:
        wt_p = jnp.pad(wt_p, ((0, 0), (0, Np - N)))
        b_p = jnp.pad(b_p, ((0, 0), (0, Np - N)))

    grid = (m_blocks, n_blocks)

    cost = pl.CostEstimate(
        flops=2 * Mp * K * Np,
        transcendentals=0,
        bytes_accessed=(Mp * K + K * Np) * in_sz + Np * 4 + Mp * Np * out_sz,
    )

    buf1 = {"pipeline_mode": pl.Buffered(1)}
    x_spec = pl.BlockSpec((tm, K), lambda i, j: (i, 0),
                          **(buf1 if x_bufs == 1 else {}))
    w_spec = pl.BlockSpec((K, tn), lambda i, j: (0, j),
                          **(buf1 if w_bufs == 1 else {}))
    b_spec = pl.BlockSpec((1, tn), lambda i, j: (0, j),
                          **(buf1 if w_bufs == 1 else {}))

    out_p = pl.pallas_call(
        _linear_kernel,
        out_shape=jax.ShapeDtypeStruct((Mp, Np), out_dtype),
        grid_spec=pltpu.PrefetchScalarGridSpec(
            num_scalar_prefetch=0,
            grid=grid,
            in_specs=[x_spec, w_spec, b_spec],
            out_specs=pl.BlockSpec((tm, tn), lambda i, j: (i, j)),
        ),
        compiler_params=pltpu.CompilerParams(
            dimension_semantics=("parallel", "parallel"),
            vmem_limit_bytes=int(vmem_limit_bytes),
        ),
        cost_estimate=cost,
    )(x_p, wt_p, b_p)

    if (Mp, Np) != (M, N):
        out_p = out_p[:M, :N]
    return out_p


if __name__ == "__main__":
    # Module config: SoftmaxMargin(input_dim=32, class_number=16)
    batch = 8
    input_dim = 32
    class_number = 16

    key = jax.random.PRNGKey(0)
    kx, kw, kb = jax.random.split(key, 3)

    x = jax.random.normal(kx, (batch, input_dim), dtype=jnp.float32)
    # Deterministic param init (uniform like PyTorch Linear default bound 1/sqrt(K)).
    bound = 1.0 / (input_dim ** 0.5)
    weight = jax.random.uniform(kw, (class_number, input_dim),
                                minval=-bound, maxval=bound, dtype=jnp.float32)
    bias = jax.random.uniform(kb, (class_number,),
                              minval=-bound, maxval=bound, dtype=jnp.float32)

    ref = x @ weight.T + bias

    # f32 path: exact PyTorch nn.Linear semantics.
    out = jax.block_until_ready(softmax_margin_forward(x, weight, bias))
    assert out.shape == (batch, class_number)
    assert jnp.allclose(out, ref, atol=1e-5, rtol=1e-5), "f32 mismatch vs reference"

    # Padding / multi-tile path: M not a multiple of 8, N not a multiple of 128.
    x2 = jax.random.normal(kx, (50, 40), dtype=jnp.float32)
    w2 = jax.random.normal(kw, (20, 40), dtype=jnp.float32) * 0.1
    b2 = jax.random.normal(kb, (20,), dtype=jnp.float32) * 0.1
    out2 = jax.block_until_ready(softmax_margin_forward(x2, w2, b2, tm=16))
    ref2 = x2 @ w2.T + b2
    assert out2.shape == (50, 20)
    assert jnp.allclose(out2, ref2, atol=1e-4, rtol=1e-4), "tiled mismatch vs reference"

    # bf16 compute path (memory-bandwidth / MXU-rate lever): looser tolerance.
    out_bf16 = jax.block_until_ready(
        softmax_margin_forward(x, weight, bias, compute_dtype=jnp.bfloat16))
    assert jnp.allclose(out_bf16, ref, atol=5e-2, rtol=5e-2), "bf16 mismatch vs reference"

    print("KERNEL_OK")
</pallas_src>

<mosaic_0001>
module attributes {stable_mosaic.version = 11 : i64} {
  func.func @_linear_kernel(%arg0: i32, %arg1: i32, %arg2: memref<8x32xf32, #tpu.memory_space<vmem>>, %arg3: memref<32x128xf32, #tpu.memory_space<vmem>>, %arg4: memref<1x128xf32, #tpu.memory_space<vmem>>, %arg5: memref<8x128xf32, #tpu.memory_space<vmem>>) attributes {dimension_semantics = [#tpu.dimension_semantics<parallel>, #tpu.dimension_semantics<parallel>], iteration_bounds = array<i64: 1, 1>, scalar_prefetch = 0 : i64, scratch_operands = 0 : i64, tpu.core_type = #tpu.core_type<tc>, window_params = [{pipeline_mode = #tpu.pipeline_mode<synchronous>, transform_indices = @transform_0, window_bounds = array<i64: 8, 32>}, {pipeline_mode = #tpu.pipeline_mode<synchronous>, transform_indices = @transform_1, window_bounds = array<i64: 32, 128>}, {pipeline_mode = #tpu.pipeline_mode<synchronous>, transform_indices = @transform_2, window_bounds = array<i64: 1, 128>}, {transform_indices = @transform_3, window_bounds = array<i64: 8, 128>}]} {
    %c0 = arith.constant 0 : index
    %c0_0 = arith.constant 0 : index
    %0 = vector.load %arg2[%c0, %c0_0] : memref<8x32xf32, #tpu.memory_space<vmem>>, vector<8x32xf32>
    %c0_1 = arith.constant 0 : index
    %c0_2 = arith.constant 0 : index
    %1 = vector.load %arg3[%c0_1, %c0_2] : memref<32x128xf32, #tpu.memory_space<vmem>>, vector<32x128xf32>
    %cst = arith.constant dense<0.000000e+00> : vector<8x128xf32>
    %2 = tpu.matmul %0, %1, %cst {dimension_numbers = #tpu.dot_dimension_numbers<[1], [0], [0], [1], [0, 0, 1, 1], [], []>} : vector<8x32xf32>, vector<32x128xf32>, vector<8x128xf32> -> vector<8x128xf32>
    %c0_3 = arith.constant 0 : index
    %c0_4 = arith.constant 0 : index
    %3 = vector.load %arg4[%c0_3, %c0_4] : memref<1x128xf32, #tpu.memory_space<vmem>>, vector<1x128xf32>
    %4 = vector.broadcast %3 : vector<1x128xf32> to vector<8x128xf32>
    %5 = arith.addf %2, %4 : vector<8x128xf32>
    %c0_5 = arith.constant 0 : index
    %c0_6 = arith.constant 0 : index
    %6 = vector.load %arg5[%c0_5, %c0_6] : memref<8x128xf32, #tpu.memory_space<vmem>>, vector<8x128xf32>
    tpu.vector_store %arg5[%c0_5, %c0_6], %5 {strides = array<i32>} : memref<8x128xf32, #tpu.memory_space<vmem>>, vector<8x128xf32>,
    return
  }
  func.func @transform_0(%arg0: i32, %arg1: i32) -> (i32, i32) {
    %c0_i32 = arith.constant 0 : i32
    %c0_i32_0 = arith.constant 0 : i32
    return %arg0, %c0_i32 : i32, i32
  }
  func.func @transform_1(%arg0: i32, %arg1: i32) -> (i32, i32) {
    %c0_i32 = arith.constant 0 : i32
    %c0_i32_0 = arith.constant 0 : i32
    return %c0_i32, %arg1 : i32, i32
  }
  func.func @transform_2(%arg0: i32, %arg1: i32) -> (i32, i32) {
    %c0_i32 = arith.constant 0 : i32
    %c0_i32_0 = arith.constant 0 : i32
    return %c0_i32, %arg1 : i32, i32
  }
  func.func @transform_3(%arg0: i32, %arg1: i32) -> (i32, i32) {
    %c0_i32 = arith.constant 0 : i32
    return %arg0, %arg1 : i32, i32
  }
}

</mosaic_0001>

<bundles_post_ra>
// kernel: tpu_custom_call.1
= control target key start
LH: loop header
LB: loop body
LE: loop exit
PB: predicated region body
PF: predicated region fallthrough
CT: control target
= control target key end

     0   :  { %8 = vsyncpa [#allocation3], 0  ;;  %s274_s0 = inlined_call_operand.hbm [shape: f32[8,32], index: 0, kind: input, shape index: {}]   ;;  %s275_s1 = inlined_call_operand.hbm [shape: f32[32,128], index: 1, kind: input, shape index: {}]   ;;  %s276_s2 = inlined_call_operand.vmem [shape: f32[1,128], index: 2, kind: input, shape index: {}]   ;;  %s277_s3 = inlined_call_operand.hbm [shape: f32[8,128], index: 3, kind: output, shape index: {}]  }
   0x1   :  { %9 = vsyncpa [#allocation6], 0 }
   0x2   :  { %10 = vsyncpa [#allocation4], 0  ;;  %s235_s12 = smov [#allocation2]   ;;  %s236_s14 = smov [#allocation5]  }
   0x3   :  { %s17_s13 = sshll.u32 %s235_s12, 4  ;;  %s26_s15 = sshll.u32 %s236_s14, 4  ;;  %s18_s13 = int_to_ptr.vmem [resolvable:$true] %s17_s13  ;;  %s27_s15 = int_to_ptr.vmem [resolvable:$true] %s26_s15 }
   0x4   :  { %s177_s16 = scalar_lea.vmem %s18_s13, 128  ;;  %p182_p1 = scmp.lt.s32.totalorder %s18_s13, %s18_s13 }
   0x5   :  { %p178_p0 = scmp.ne.s32.totalorder %s18_s13, %s177_s16  ;;  %p183_p2 = scmp.lt.s32.totalorder %s177_s16, %s177_s16 }
   0x7   :  { %p184_p3 = por %p183_p2, %p182_p1 }
   0x9   :  { %p185_p4 = pnand %p184_p3, %p178_p0 }
   0xb   :  { %188 = shalt.err (!%p185_p4)
}
   0xc   :  { %20 = dma.hbm_to_vmem [thread:$0]  %s274_s0, 128, %s18_s13, [#allocation3]  }
   0xd   :  { %s197_s19 = scalar_lea.vmem %s27_s15, 512  ;;  %p202_p6 = scmp.lt.s32.totalorder %s27_s15, %s27_s15 }
   0xe   :  { %p198_p5 = scmp.ne.s32.totalorder %s27_s15, %s197_s19  ;;  %p203_p7 = scmp.lt.s32.totalorder %s197_s19, %s197_s19 }
  0x10   :  { %p204_p8 = por %p203_p7, %p202_p6 }
  0x12   :  { %p205_p9 = pnand %p204_p8, %p198_p5 }
  0x14   :  { %208 = shalt.err (!%p205_p9)
}
  0x15   :  { %s237_s20 = smov 128   ;;  %s238_s21 = smov 8  }
  0x16   :  { %32 = dma.hbm_to_vmem [thread:$0]  %s275_s1, 512, %s27_s15, [#allocation6], %s237_s20, %s237_s20, %s238_s21  }
  0x17   :  { %229 = dma.done.wait [#allocation3], 128  }
  0x18   :  { %230 = vsyncadd [#allocation3], 4294967168 }
  0x19   :  { %231 = dma.done.wait [#allocation6], 512  }
  0x1a   :  { %232 = vsyncadd [#allocation6], 4294966784  ;;  %v239_v0 = vmov 0.0   ;;  %vm240_vm0 = vmmov 0   ;;  %v45_v1 = vld [vmem:[#allocation5 + $0x18] sm:$0xff]  ;;  %v44_v2 = vld [vmem:[#allocation5 + $0x10] sm:$0xff] }
  0x1b   :  { %151 = vmatprep.subr.mxu0 %v239_v0  ;;  %159 = vmatprep.mubr.msk.f32.mxu0 %vm240_vm0, %v239_v0  ;;  %v43_v3 = vld [vmem:[#allocation5 + $0x8] sm:$0xff]  ;;  %v42_v4 = vld [vmem:[#allocation5] sm:$0xff]  ;;  %v41_v5 = vld [vmem:[#allocation2] sm:$0xff]  ;;  %vm53_vm1 = vcmask 261120   ;;  %s241_s24 = smov [#allocation7]  }
  0x1c   :  { %152 = vmatpush3.msra.mxu0 %v45_v1  ;;  %v144_v6 = vld [vmem:[%s276_s2] ss:$0 sm:$0xff]  ;;  %s134_s25 = sshll.u32 %s241_s24, 4  ;;  %s135_s25 = int_to_ptr.vmem [resolvable:$true] %s134_s25 }
  0x1d   :  { %153 = vmatprep.subr.mxu0 %v239_v0  ;;  %s209_s26 = scalar_lea.vmem %s135_s25, 128  ;;  %p214_p11 = scmp.lt.s32.totalorder %s135_s25, %s135_s25 }
  0x1e   :  { %154 = vmatpush3.msra.mxu0 %v44_v2  ;;  %p210_p10 = scmp.ne.s32.totalorder %s135_s25, %s209_s26  ;;  %p215_p12 = scmp.lt.s32.totalorder %s209_s26, %s209_s26 }
  0x1f   :  { %155 = vmatprep.subr.mxu0 %v239_v0 }
  0x20   :  { %156 = vmatpush3.msra.mxu0 %v43_v3  ;;  %p216_p13 = por %p215_p12, %p214_p11 }
  0x21   :  { %157 = vmatprep.subr.mxu0 %v239_v0 }
  0x22   :  { %158 = vmatpush3.msra.mxu0 %v42_v4  ;;  %p217_p0 = pnand %p216_p13, %p210_p10 }
  0x23   :  { %160 = vmatmul.mubr.msk.f32.vlgmr.msra.gmra.mxu0 %vm53_vm1, %v41_v5 }
  0xe3   :  { %v123_v7 = vpop.f32.mrf.mxu0 }
  0xe4   :  { %v124_v8 = vadd.f32 %v144_v6, %v123_v7 }
  0xe5   :  { %v161_v9 = vpop.f32.mrf.mxu0 }
  0xe6   :  { %127 = vst [vmem:[#allocation7] sm:$0xff] %v124_v8 }
  0xe7   :  { %220 = shalt.err (!%p217_p0)
}
  0xe8   :  { %137 = dma.vmem_to_hbm [thread:$0]  %s135_s25, 128, %s277_s3, [#allocation4]  }
  0xe9   :  { %233 = dma.done.wait [#allocation4], 128  }
  0xea   :  { %234 = vsyncadd [#allocation4], 4294967168 }
  0xeb   :  { %141 = vsyncpa [#allocation3], 1 }
  0xec   :  { %142 = vsyncpa [#allocation6], 1 }
  0xed   :  { %143 = vsyncpa [#allocation4], 1 }

</bundles_post_ra>
